<compile_context>
chip_gen: v7x
topology: tpu7x:2x2x1
jax: 0.10.0
libtpu: 0.0.40
codegen_flags: <defaults>
</compile_context>

<pallas_src>
import functools

import jax
import jax.numpy as jnp
from jax import lax
from jax.experimental import pallas as pl
from jax.experimental.pallas import tpu as pltpu


def _round_up(v, m):
    return ((v + m - 1) // m) * m


def _log_softmax(x):
    m = jnp.max(x, axis=-1, keepdims=True)
    z = x - m
    lse = jnp.log(jnp.sum(jnp.exp(z), axis=-1, keepdims=True))
    return z - lse


def _pow(base, exponent):
    e = float(exponent)
    if e == int(e):
        # integer exponent -> integer_pow (exact, safe even if base is ~-1e-7)
        return base ** int(e)
    # non-integer gamma: clamp to avoid NaN from tiny negative rounding / log(0)
    safe = jnp.maximum(base, 1e-12)
    return jnp.exp(e * jnp.log(safe))


def _row_mask(tile_n, n_rows):
    """(TILE_N, 1) bool: True for rows that exist in the un-padded batch."""
    row = pl.program_id(0) * tile_n + lax.broadcasted_iota(jnp.int32, (tile_n, 1), 0)
    return row < n_rows


# ---------------------------------------------------------------------------
# Kernels
# ---------------------------------------------------------------------------
def _ce_kernel(x_ref, t_ref, out_ref, *, n_rows):
    x = x_ref[...].astype(jnp.float32)            # [T, C]
    t = t_ref[...].astype(jnp.float32)            # [T, C]
    tn = x.shape[0]

    logp = _log_softmax(x)
    row = jnp.sum(-t * logp, axis=-1, keepdims=True)            # [T, 1]
    row = jnp.where(_row_mask(tn, n_rows), row, 0.0)            # mask ragged tail
    out_ref[0] = jnp.sum(row, axis=0, keepdims=True)            # (1,1) partial sum


def _ce_boost_kernel(x_ref, t_ref, b_ref, out_ref, *, alpha, gamma, nb_old, mode, n_rows):
    x = x_ref[...].astype(jnp.float32)            # [T, C]
    t = t_ref[...].astype(jnp.float32)            # [T, C]
    b = b_ref[...].astype(jnp.float32)            # [T, Cb]  (native width, no padding)

    tn, c = x.shape
    cb = b.shape[-1]

    logp = _log_softmax(x)
    w = -t * logp                                 # [T, C]
    base = jnp.sum(w, axis=-1, keepdims=True)     # [T, 1]  (== plain soft-target CE)

    # softmax stats of the boosting block (exact divide: kernel is HBM-bound,
    # the approx reciprocal bought nothing and cost accuracy)
    bm = jnp.max(b, axis=-1, keepdims=True)
    be = jnp.exp(b - bm)                          # [T, Cb]
    inv = 1.0 / jnp.sum(be, axis=-1, keepdims=True)             # [T, 1]

    if mode == "old":
        # loss = sum(w) + sum_{j < nb_old} w_j * (alpha*(1-pt_j)^gamma - 1)
        bs = be * inv                                             # [T, Cb]
        col_b = lax.broadcasted_iota(jnp.int32, (tn, cb), 1)
        fm1 = jnp.where(col_b < nb_old,
                        alpha * _pow(1.0 - bs, gamma) - 1.0, 0.0)  # [T, Cb]
        k = min(cb, c)                            # static; slices start at lane 0,
        w_head = w if k == c else w[:, :k]        # stay inside the first lane tile
        fm1_head = fm1 if k == cb else fm1[:, :k]
        corr = jnp.sum(w_head * fm1_head, axis=-1, keepdims=True)
        row = base + corr
    else:  # "new"
        # pt = softmax(boosting)[:, -1] -> static one-lane slice (column nb_old)
        pt = be[:, nb_old:nb_old + 1] * inv                       # [T, 1]
        f_new = alpha * _pow(1.0 - pt, gamma)                     # [T, 1]
        col = lax.broadcasted_iota(jnp.int32, (tn, c), 1)
        w_new = jnp.sum(jnp.where(col >= nb_old, w, 0.0), axis=-1, keepdims=True)
        row = base + (f_new - 1.0) * w_new

    row = jnp.where(_row_mask(tn, n_rows), row, 0.0)              # mask ragged tail
    out_ref[0] = jnp.sum(row, axis=0, keepdims=True)              # (1,1) partial sum


# ---------------------------------------------------------------------------
# Wrapper
# ---------------------------------------------------------------------------
def _derive_vmem_limit(block_bytes_total, tile_n, c):
    dbl = 2 * (block_bytes_total + 4)        # double-buffered inputs + (1,1,1) output
    interm = 6 * tile_n * c * 4              # live f32 temporaries (logp, w, exp, ...)
    limit = dbl + interm + (2 << 20)         # internal-scratch slack
    # floor keeps tiny tiles from starving the compiler; ceiling leaves headroom
    # inside v7x's 64 MiB physical VMEM.
    return int(min(max(limit, 16 << 20), 48 << 20))


def soft_target_ce_boosting(x, target, boosting_output=None, boosting_focal=None,
                            alpha=1.0, gamma=1.0, tile_n=None):
    """Forward pass of SoftTargetCrossEntropyBoosting. Returns a scalar loss."""
    n, c = x.shape

    has_boost = boosting_output is not None
    if has_boost:
        assert boosting_focal in ("old", "new"), boosting_focal
        cb = boosting_output.shape[1]
        nb_old = cb - 1
        # reference writes f[:, :nb_old] of an (N, C) tensor -> nb_old must fit
        assert nb_old <= c, (nb_old, c)

    # --- batch tile: ~4 MiB per (widest) input block, multiple of 8 sublanes ---
    if tile_n is None:
        itemsize = max(jnp.dtype(x.dtype).itemsize, jnp.dtype(target.dtype).itemsize)
        budget = 4 * 1024 * 1024
        tile_n = budget // max(1, c * itemsize)
    tile_n = max(8, (int(tile_n) // 8) * 8)
    tile_n = min(tile_n, _round_up(n, 8))
    if n > 8:
        # keep >= 2 tiles so the ("parallel",) axis shards across v7x's two TCs
        tile_n = min(tile_n, _round_up(pl.cdiv(n, 2), 8))
    num_tiles = pl.cdiv(n, tile_n)

    xt_spec = pl.BlockSpec((tile_n, c), lambda i: (i, 0))
    out_spec = pl.BlockSpec((1, 1, 1), lambda i: (i, 0, 0))
    out_shape = jax.ShapeDtypeStruct((num_tiles, 1, 1), jnp.float32)

    block_bytes = (tile_n * c * jnp.dtype(x.dtype).itemsize
                   + tile_n * c * jnp.dtype(target.dtype).itemsize)
    if has_boost:
        block_bytes += tile_n * cb * jnp.dtype(boosting_output.dtype).itemsize

    cparams = pltpu.CompilerParams(
        dimension_semantics=("parallel",),
        vmem_limit_bytes=_derive_vmem_limit(block_bytes, tile_n, c),
    )

    if not has_boost:
        kernel = functools.partial(_ce_kernel, n_rows=n)
        partials = pl.pallas_call(
            kernel,
            out_shape=out_shape,
            grid=(num_tiles,),
            in_specs=[xt_spec, xt_spec],
            out_specs=out_spec,
            compiler_params=cparams,
        )(x, target)
        return jnp.sum(partials) / float(n)

    # boosting logits at native width: (tile_n, cb) block -- last dim equals the
    # full array dim, so no lane padding / sentinel columns are needed.
    b_spec = pl.BlockSpec((tile_n, cb), lambda i: (i, 0))

    kernel = functools.partial(_ce_boost_kernel, alpha=float(alpha), gamma=gamma,
                               nb_old=nb_old, mode=boosting_focal, n_rows=n)
    partials = pl.pallas_call(
        kernel,
        out_shape=out_shape,
        grid=(num_tiles,),
        in_specs=[xt_spec, xt_spec, b_spec],
        out_specs=out_spec,
        compiler_params=cparams,
    )(x, target, boosting_output)
    return jnp.sum(partials) / float(n)


# ---------------------------------------------------------------------------
# Pure-JAX reference (mirrors the PyTorch module exactly).
# ---------------------------------------------------------------------------
def _reference(x, target, boosting_output=None, boosting_focal=None, alpha=1.0, gamma=1.0):
    logp = jax.nn.log_softmax(x, axis=-1)
    if boosting_output is None:
        return jnp.mean(jnp.sum(-target * logp, axis=-1))
    nb_old = boosting_output.shape[1] - 1
    sm = jax.nn.softmax(boosting_output, axis=-1)
    f = jnp.ones_like(x)
    if boosting_focal == "old":
        pt = sm[..., :-1]
        f = f.at[:, :nb_old].set(alpha * (1 - pt) ** gamma)
    elif boosting_focal == "new":
        pt = sm[..., -1]
        f = f.at[:, nb_old:].set(alpha * (1 - pt[:, None]) ** gamma)
    else:
        raise AssertionError(boosting_focal)
    return jnp.mean(jnp.sum(-target * f * logp, axis=-1))


if __name__ == "__main__":
    key = jax.random.PRNGKey(0)
    k1, k2, k3 = jax.random.split(key, 3)

    N, C = 64, 32           # batch, total classes
    NB_OLD = 12             # old classes -> boosting_output has NB_OLD + 1 columns
    alpha, gamma = 1.0, 1

    x = jax.random.normal(k1, (N, C), dtype=jnp.float32)
    target = jax.nn.softmax(jax.random.normal(k2, (N, C), dtype=jnp.float32), axis=-1)
    boosting_output = jax.random.normal(k3, (N, NB_OLD + 1), dtype=jnp.float32)

    # tile_n=16 -> multi-tile pipelined path.
    out_none = soft_target_ce_boosting(x, target, tile_n=16)
    out_old = soft_target_ce_boosting(x, target, boosting_output, "old", alpha, gamma, tile_n=16)
    out_new = soft_target_ce_boosting(x, target, boosting_output, "new", alpha, gamma, tile_n=16)
    jax.block_until_ready((out_none, out_old, out_new))

    ref_none = _reference(x, target)
    ref_old = _reference(x, target, boosting_output, "old", alpha, gamma)
    ref_new = _reference(x, target, boosting_output, "new", alpha, gamma)

    assert jnp.allclose(out_none, ref_none, rtol=1e-5, atol=1e-5), (out_none, ref_none)
    assert jnp.allclose(out_old, ref_old, rtol=1e-5, atol=1e-5), (out_old, ref_old)
    assert jnp.allclose(out_new, ref_new, rtol=1e-5, atol=1e-5), (out_new, ref_new)

    # Ragged batch (N not a multiple of the tile): exercises the in-kernel row
    # mask on the partial last block — NO host-side padding is performed.
    N2 = 24
    x2, t2, b2 = x[:N2], target[:N2], boosting_output[:N2]
    out2_none = soft_target_ce_boosting(x2, t2, tile_n=16)
    out2_old = soft_target_ce_boosting(x2, t2, b2, "old", alpha, gamma, tile_n=16)
    out2_new = soft_target_ce_boosting(x2, t2, b2, "new", alpha, gamma, tile_n=16)
    jax.block_until_ready((out2_none, out2_old, out2_new))
    assert jnp.allclose(out2_none, _reference(x2, t2), rtol=1e-5, atol=1e-5)
    assert jnp.allclose(out2_old, _reference(x2, t2, b2, "old", alpha, gamma),
                        rtol=1e-5, atol=1e-5)
    assert jnp.allclose(out2_new, _reference(x2, t2, b2, "new", alpha, gamma),
                        rtol=1e-5, atol=1e-5)

    # Default tile heuristic (no explicit tile_n): 4 MiB budget + >=2-tile cap.
    out3 = soft_target_ce_boosting(x, target, boosting_output, "old", alpha, gamma)
    jax.block_until_ready(out3)
    assert jnp.allclose(out3, ref_old, rtol=1e-5, atol=1e-5), (out3, ref_old)

    print("KERNEL_OK")
</pallas_src>

<mosaic_0001>
module attributes {stable_mosaic.version = 11 : i64} {
  func.func @_ce_kernel(%arg0: i32, %arg1: memref<16x32xf32, #tpu.memory_space<vmem>>, %arg2: memref<16x32xf32, #tpu.memory_space<vmem>>, %arg3: memref<1x1x1xf32, #tpu.memory_space<vmem>>) attributes {dimension_semantics = [#tpu.dimension_semantics<parallel>], iteration_bounds = array<i64: 4>, scalar_prefetch = 0 : i64, scratch_operands = 0 : i64, tpu.core_type = #tpu.core_type<tc>, window_params = [{transform_indices = @transform_0, window_bounds = array<i64: 16, 32>}, {transform_indices = @transform_1, window_bounds = array<i64: 16, 32>}, {transform_indices = @transform_2, window_bounds = array<i64: 1, 1, 1>}]} {
    %c0 = arith.constant 0 : index
    %c0_0 = arith.constant 0 : index
    %0 = vector.load %arg1[%c0, %c0_0] : memref<16x32xf32, #tpu.memory_space<vmem>>, vector<16x32xf32>
    %c0_1 = arith.constant 0 : index
    %c0_2 = arith.constant 0 : index
    %1 = vector.load %arg2[%c0_1, %c0_2] : memref<16x32xf32, #tpu.memory_space<vmem>>, vector<16x32xf32>
    %cst = arith.constant dense<0xFF800000> : vector<16xf32>
    %2 = vector.multi_reduction <maximumf>, %0, %cst [1] : vector<16x32xf32> to vector<16xf32>
    %3 = vector.shape_cast %2 : vector<16xf32> to vector<16x1xf32>
    %4 = vector.broadcast %3 : vector<16x1xf32> to vector<16x32xf32>
    %5 = arith.subf %0, %4 : vector<16x32xf32>
    %6 = math.exp %5 : vector<16x32xf32>
    %cst_3 = arith.constant dense<0.000000e+00> : vector<16xf32>
    %7 = vector.multi_reduction <add>, %6, %cst_3 [1] : vector<16x32xf32> to vector<16xf32>
    %8 = vector.shape_cast %7 : vector<16xf32> to vector<16x1xf32>
    %9 = math.log %8 : vector<16x1xf32>
    %10 = vector.broadcast %9 : vector<16x1xf32> to vector<16x32xf32>
    %11 = arith.subf %5, %10 : vector<16x32xf32>
    %cst_4 = arith.constant 0.000000e+00 : f32
    %12 = vector.broadcast %cst_4 : f32 to vector<16x32xf32>
    %13 = arith.subf %12, %1 : vector<16x32xf32>
    %14 = arith.mulf %13, %11 : vector<16x32xf32>
    %cst_5 = arith.constant dense<0.000000e+00> : vector<16xf32>
    %15 = vector.multi_reduction <add>, %14, %cst_5 [1] : vector<16x32xf32> to vector<16xf32>
    %16 = vector.shape_cast %15 : vector<16xf32> to vector<16x1xf32>
    %c16_i32 = arith.constant 16 : i32
    %17 = arith.muli %arg0, %c16_i32 : i32
    %18 = tpu.iota {dimensions = array<i32: 0>} : vector<16x1xi32>
    %19 = vector.broadcast %17 : i32 to vector<16x1xi32>
    %20 = arith.addi %19, %18 : vector<16x1xi32>
    %c64_i32 = arith.constant 64 : i32
    %21 = vector.broadcast %c64_i32 : i32 to vector<16x1xi32>
    %22 = arith.cmpi slt, %20, %21 : vector<16x1xi32>
    %cst_6 = arith.constant 0.000000e+00 : f32
    %23 = vector.broadcast %cst_6 : f32 to vector<16x1xf32>
    %24 = arith.select %22, %16, %23 : vector<16x1xi1>, vector<16x1xf32>
    %cst_7 = arith.constant dense<0.000000e+00> : vector<1xf32>
    %25 = vector.multi_reduction <add>, %24, %cst_7 [0] : vector<16x1xf32> to vector<1xf32>
    %26 = vector.shape_cast %25 : vector<1xf32> to vector<1x1xf32>
    %c0_8 = arith.constant 0 : index
    %c0_9 = arith.constant 0 : index
    %c0_10 = arith.constant 0 : index
    %27 = vector.load %arg3[%c0_8, %c0_9, %c0_10] : memref<1x1x1xf32, #tpu.memory_space<vmem>>, vector<1x1x1xf32>
    %28 = vector.shape_cast %27 : vector<1x1x1xf32> to vector<1x1xf32>
    %29 = vector.shape_cast %26 : vector<1x1xf32> to vector<1x1x1xf32>
    tpu.vector_store %arg3[%c0_8, %c0_9, %c0_10], %29 {strides = array<i32>} : memref<1x1x1xf32, #tpu.memory_space<vmem>>, vector<1x1x1xf32>,
    return
  }
  func.func @transform_0(%arg0: i32) -> (i32, i32) {
    %c0_i32 = arith.constant 0 : i32
    %c0_i32_0 = arith.constant 0 : i32
    return %arg0, %c0_i32 : i32, i32
  }
  func.func @transform_1(%arg0: i32) -> (i32, i32) {
    %c0_i32 = arith.constant 0 : i32
    %c0_i32_0 = arith.constant 0 : i32
    return %arg0, %c0_i32 : i32, i32
  }
  func.func @transform_2(%arg0: i32) -> (i32, i32, i32) {
    %c0_i32 = arith.constant 0 : i32
    %c0_i32_0 = arith.constant 0 : i32
    %c0_i32_1 = arith.constant 0 : i32
    return %arg0, %c0_i32, %c0_i32_0 : i32, i32, i32
  }
}

</mosaic_0001>

<bundles_post_ra>
// kernel: tpu_custom_call.1
= control target key start
LH: loop header
LB: loop body
LE: loop exit
PB: predicated region body
PF: predicated region fallthrough
CT: control target
= control target key end

     0   :  { %s333_s9 = smov 0   ;;  %s368_s0 = inlined_call_operand.vmem [shape: f32[64,32], index: 0, kind: input, shape index: {}]   ;;  %s369_s1 = inlined_call_operand.vmem [shape: f32[64,32], index: 1, kind: input, shape index: {}]   ;;  %s370_s2 = inlined_call_operand.vmem [shape: f32[4,1,1], index: 2, kind: output, shape index: {}]  }
   0x1 LB: > { %s339_s10 = sadd.s32 4294967295, %s316_s9   ;;  %p286_p0 = scmp.ge.s32.totalorder %s316_s9, 1  ;;  %s316_s9 = sphi %s333_s9, %s12_s9  }
   0x2   : > { %p124_p1 = scmp.lt.s32.totalorder %s316_s9, 5 }
   0x4   : > { %p125_p2 = pnand %p286_p0, %p124_p1 }
   0x5   : > { %s287_s11 = sshll.u32 (!%p125_p2), %s339_s10, 1  ;;  %vm168_vm0 = vcmask (!%p125_p2), 261120   ;;  %v204_v30 = vlaneseq (!%p125_p2)  ;;  %s291_s19 = sshll.u32 (!%p125_p2), %s339_s10, 4  ;;  %vm221_vm3 = vcmask (!%p125_p2), 0  }
   0x6   : > { %128 = sbr.rel (%p125_p2) target bundleno = 498 (0x1f2), region = 28  ;;  %p150_p3 = scmp.lt.s32.totalorder (!%p125_p2), %s287_s11, 7  ;;  %v207_v33 = vstv (!%p125_p2), %s291_s19 }
   0x7   : > { %v205_v31 = vshrl.u32 (!%p125_p2), %v204_v30, 7  ;;  %p161_p4 = scmp.lt.s32.totalorder (!%p125_p2), %s339_s10, 3 }
   0x9   : > { %v206_v32 = vadd.s32 (!%p125_p2), 8, %v205_v31  ;;  %v208_v34 = vadd.s32 (!%p125_p2), %v207_v33, %v205_v31 }
   0xb   : > { %v209_v35 = vadd.s32 (!%p125_p2), %v207_v33, %v206_v32  ;;  %vm210_vm1 = vcmp.lt.s32.totalorder (!%p125_p2), %v208_v34, 64 }
   0xd   : > { %s372_s11 = smov (!%p150_p3, %s287_s11), 7  ;;  %vm211_vm2 = vcmp.lt.s32.totalorder %v209_v35, 64  ;;  %s374_s10 = smov (!%p161_p4, %s339_s10), 3 }
   0xe   : > { %s288_s12 = sshll.u32 %s372_s11, 3  ;;  %s163_s22 = scalar_lea.vmem %s370_s2, %s374_s10 }
   0xf   : > { %s153_s15 = scalar_lea.vmem %s368_s0, %s288_s12  ;;  %s159_s18 = scalar_lea.vmem %s369_s1, %s288_s12 }
  0x10   : > { %v164_v0 = vld [vmem:[%s153_s15] sm:$0xff]  ;;  %v165_v1 = vld [vmem:[%s153_s15 + $0x8] sm:$0xff] }
  0x11   : > { %v169_v2 = vsel %vm168_vm0, %v164_v0, -inf  ;;  %v172_v3 = vsel %vm168_vm0, %v165_v1, -inf  ;;  %v166_v16 = vld [vmem:[%s159_s18] sm:$0xff]  ;;  %v167_v20 = vld [vmem:[%s159_s18 + $0x8] sm:$0xff] }
  0x12   : > { %170 = vmax.xlane.f32.xlu0 %v169_v2  ;;  %v193_v19 = vsub.f32 0.0, %v166_v16  ;;  %v194_v25 = vsub.f32 0.0, %v167_v20 }
  0x16   : > { %173 = vmax.xlane.f32.xlu0 %v172_v3 }
  0x9f   : > { %v171_v4 = vpop.xlane.xlu0 %170 }
  0xa0   : > { %v175_v5 = vsub.f32 %v164_v0, %v171_v4 }
  0xa2   : > { %v177_v6 = vmul.f32 1.442695, %v175_v5 }
  0xa3   : > { %v174_v7 = vpop.xlane.xlu0 %173 }
  0xa4   : > { %302 = vpow2.f32 %v177_v6  ;;  %v176_v8 = vsub.f32 %v165_v1, %v174_v7 }
  0xa6   : > { %v179_v9 = vmul.f32 1.442695, %v176_v8 }
  0xa8   : > { %304 = vpow2.f32 %v179_v9 }
  0xae   : > { %v303_v10 = vpop.eup %302 }
  0xaf   : > { %v181_v11 = vsel %vm168_vm0, %v303_v10, 0.0 }
  0xb0   : > { %182 = vadd.xlane.f32.xlu1 %v181_v11 }
  0xb2   : > { %v305_v12 = vpop.eup %304 }
  0xb3   : > { %v184_v13 = vsel %vm168_vm0, %v305_v12, 0.0 }
  0xb4   : > { %185 = vadd.xlane.f32.xlu1 %v184_v13 }
 0x13d   : > { %v183_v14 = vpop.xlane.xlu1 %182 }
 0x13e   : > { %306 = vlog2.f32 %v183_v14 }
 0x141   : > { %v186_v15 = vpop.xlane.xlu1 %185 }
 0x142   : > { %308 = vlog2.f32 %v186_v15 }
 0x148   : > { %v307_v17 = vpop.eup %306 }
 0x149   : > { %v188_v18 = vmul.f32 0.6931472, %v307_v17 }
 0x14b   : > { %v191_v21 = vsub.f32 %v175_v5, %v188_v18 }
 0x14c   : > { %v309_v22 = vpop.eup %308 }
 0x14d   : > { %v190_v23 = vmul.f32 0.6931472, %v309_v22  ;;  %v195_v24 = vmul.f32 %v193_v19, %v191_v21 }
 0x14f   : > { %v197_v26 = vsel %vm168_vm0, %v195_v24, 0.0  ;;  %v192_v27 = vsub.f32 %v176_v8, %v190_v23 }
 0x150   : > { %198 = vadd.xlane.f32.xlu0 %v197_v26 }
 0x151   : > { %v196_v28 = vmul.f32 %v194_v25, %v192_v27 }
 0x153   : > { %v200_v29 = vsel %vm168_vm0, %v196_v28, 0.0 }
 0x154   : > { %201 = vadd.xlane.f32.xlu1 %v200_v29 }
 0x1dd   : > { %v199_v36 = vpop.xlane.xlu0 %198 }
 0x1de   : > { %v212_v38 = vsel %vm210_vm1, %v199_v36, 0.0 }
 0x1e1   : > { %v202_v37 = vpop.xlane.xlu1 %201 }
 0x1e2   : > { %v213_v39 = vsel %vm211_vm2, %v202_v37, 0.0 }
 0x1e3   : > { %v214_v40 = vadd.f32 %v213_v39, %v212_v38 }
 0x1e5   : > { %v215_v41 = vrot.slane %v214_v40, 4 }
 0x1e7   : > { %v216_v42 = vadd.f32 %v215_v41, %v214_v40 }
 0x1e9   : > { %v217_v43 = vrot.slane %v216_v42, 2 }
 0x1eb   : > { %v218_v44 = vadd.f32 %v217_v43, %v216_v42 }
 0x1ed   : > { %v219_v45 = vrot.slane %v218_v44, 1 }
 0x1ef   : > { %v220_v46 = vadd.f32 %v219_v45, %v218_v44 }
 0x1f1   : > { %222 = vst.msk [vmem:[%s163_s22] sm:$0x1] %vm221_vm3, %v220_v46 }
 0x1f2 PF: > { %s12_s9 = sadd.s32 1, %s316_s9  }
 0x1f3   : > { %p9_p5 = scmp.ge.s32.totalorder %s12_s9, 6  }
 0x1f5   :  { %11 = sbr.rel (!%p9_p5) target bundleno = 1 (0x1), region = 61 }

</bundles_post_ra>
